<compile_context>
chip_gen: v5e
topology: v5e:2x2
jax: 0.10.0
libtpu: 0.0.40
codegen_flags: <defaults>
</compile_context>

<pallas_src>
import functools
import math

import jax
import jax.numpy as jnp
from jax.experimental import pallas as pl
from jax.experimental.pallas import tpu as pltpu

_LANE = 128
_VMEM_BUDGET_BYTES = 32 * 1024 * 1024   # tile sizing budget (fits v7x 64 MiB physical)
_VMEM_LIMIT_BYTES = 48 * 1024 * 1024    # raised scoped-VMEM limit (v5e default = 16 MiB)


def _cdiv(a, b):
    return -(-a // b)


def _round_up(v, m):
    return _cdiv(v, m) * m


def _compiler_params():
    return pltpu.CompilerParams(
        dimension_semantics=("parallel",),
        vmem_limit_bytes=_VMEM_LIMIT_BYTES,
    )


def _lane_tile(out_len, budget_bytes, bytes_per_col, prefer=2048):
    """128-aligned lane tile: fat enough to amortize per-step overhead, small enough
    to fit the double-buffered VMEM budget and to leave >= 2 grid steps (v7x dual TC)."""
    max_cols = max(_LANE, (budget_bytes // max(1, bytes_per_col)) // _LANE * _LANE)
    t = min(prefer, max_cols)
    if out_len > _LANE:
        t = min(t, _round_up(_cdiv(out_len, 2), _LANE))
    return max(_LANE, (t // _LANE) * _LANE)


# ----------------------------- kernels --------------------------------------


def _copy_kernel(x_ref, o_ref):
    # Truncation: lane-aligned tiled copy; repeat/truncate handled by BlockSpecs.
    o_ref[...] = x_ref[...]


def _repeat_pack_kernel(x_ref, o_ref):
    # Output block width is an exact multiple of the waveform length: write k copies
    # of the resident waveform as one lane-dense block (unmasked full-block store).
    k = o_ref.shape[1] // x_ref.shape[1]
    x = x_ref[...]
    o_ref[...] = jnp.concatenate([x] * k, axis=1) if k > 1 else x


def _repeat_slide_kernel(x_ext_ref, o_ref, *, length, tile):
    # x_ext_ref holds the waveform periodically extended to >= length + tile and is
    # resident in VMEM; output tile r covers columns [r*tile, r*tile + tile).
    start = (pl.program_id(0) * tile) % length
    if length % _LANE == 0:                       # tile is a multiple of 128 too
        start = pl.multiple_of(start, _LANE)
    o_ref[...] = x_ext_ref[:, pl.ds(start, tile)]


# ----------------------------- wrapper --------------------------------------


def pad_trunc_wav(x: jax.Array, max_len: int = 6 * 16000) -> jax.Array:
    """JAX/Pallas equivalent of Pad_trunc_wav.forward."""
    B, L = x.shape
    itemsize = jnp.dtype(x.dtype).itemsize

    if L >= max_len:
        # -------- truncation: pipelined tiled copy ---------------------------
        t = _lane_tile(max_len, _VMEM_BUDGET_BYTES, 4 * B * itemsize)
        grid = (_cdiv(max_len, t),)
        return pl.pallas_call(
            _copy_kernel,
            out_shape=jax.ShapeDtypeStruct((B, max_len), x.dtype),
            grid=grid,
            in_specs=[pl.BlockSpec((B, t), lambda r: (0, r))],
            out_specs=pl.BlockSpec((B, t), lambda r: (0, r)),
            compiler_params=_compiler_params(),
            cost_estimate=pl.CostEstimate(
                flops=0, transcendentals=0,
                bytes_accessed=2 * B * max_len * itemsize),
        )(x)

    # ------------ repeat + truncate (L < max_len) -----------------------------
    # Smallest lane-aligned output block that is a whole number of waveform copies.
    period = (_LANE // math.gcd(L, _LANE)) * L
    # VMEM cap on output-block width (double-buffered out + resident in).
    budget_cols = max(_LANE, (_VMEM_BUDGET_BYTES // (4 * B * itemsize)) - L)

    if period <= max_len and period <= budget_cols:
        # Primary: pack several whole copies per grid step (static indexing only,
        # lane-dense unmasked stores, grid shrinks from cdiv(max_len, L) to
        # cdiv(max_len, k*L)).
        prefer = _lane_tile(max_len, _VMEM_BUDGET_BYTES, 4 * B * itemsize)
        k_per = max(1, min(prefer // period, max_len // (2 * period)))
        blk = min(k_per * period, (budget_cols // period) * period)
        grid = (_cdiv(max_len, blk),)
        return pl.pallas_call(
            _repeat_pack_kernel,
            out_shape=jax.ShapeDtypeStruct((B, max_len), x.dtype),
            grid=grid,
            in_specs=[pl.BlockSpec((B, L), lambda r: (0, 0))],   # resident waveform
            out_specs=pl.BlockSpec((B, blk), lambda r: (0, r)),
            compiler_params=_compiler_params(),
            cost_estimate=pl.CostEstimate(
                flops=0, transcendentals=0,
                bytes_accessed=(B * L + B * max_len) * itemsize),
        )(x)

    # General fallback (e.g. lcm(L, 128) too wide to be a block): fixed lane-aligned
    # output tile; waveform is periodically extended once (cheap, << output traffic)
    # so every output tile is one contiguous window of the resident extension.
    # TODO(synk): replace the wrapper-side jnp.tile with an in-kernel HBM->HBM DMA
    #             scheme if this path ever becomes hot.
    t = _lane_tile(max_len, _VMEM_BUDGET_BYTES - 4 * B * L * itemsize,
                   4 * B * itemsize)
    reps = 1 + _cdiv(t, L)
    x_ext = jnp.tile(x, (1, reps))                 # width reps*L >= L + t
    grid = (_cdiv(max_len, t),)
    kernel = functools.partial(_repeat_slide_kernel, length=L, tile=t)
    return pl.pallas_call(
        kernel,
        out_shape=jax.ShapeDtypeStruct((B, max_len), x.dtype),
        grid=grid,
        in_specs=[pl.BlockSpec((B, reps * L), lambda r: (0, 0))],  # resident, full width
        out_specs=pl.BlockSpec((B, t), lambda r: (0, r)),
        compiler_params=_compiler_params(),
        cost_estimate=pl.CostEstimate(
            flops=0, transcendentals=0,
            bytes_accessed=(B * reps * L + B * max_len) * itemsize),
    )(x_ext)


# ----------------------------- reference & test ------------------------------


def _reference(x: jnp.ndarray, max_len: int) -> jnp.ndarray:
    """Pure-JAX reference mirroring the PyTorch code."""
    L = x.shape[1]
    if L < max_len:
        multiple = max_len // L + 1
        return jnp.concatenate((x,) * multiple, axis=1)[:, :max_len]
    return x[:, :max_len]


if __name__ == "__main__":
    key = jax.random.PRNGKey(0)
    k1, k2, k3 = jax.random.split(key, 3)
    B = 2

    # case 1: L < max_len, L a multiple of 128 (pad by repetition + truncate)
    x1 = jax.random.normal(k1, (B, 384), dtype=jnp.float32)
    o1 = pad_trunc_wav(x1, 1024)
    jax.block_until_ready(o1)
    assert o1.shape == (B, 1024)
    assert jnp.array_equal(o1, _reference(x1, 1024))

    # case 2: L >= max_len (pure truncation), tiled + pipelined copy
    x2 = jax.random.normal(k2, (B, 1280), dtype=jnp.float32)
    o2 = pad_trunc_wav(x2, 1024)
    jax.block_until_ready(o2)
    assert o2.shape == (B, 1024)
    assert jnp.array_equal(o2, _reference(x2, 1024))

    # case 3: L < max_len with L NOT a multiple of 128 (lane-aligned packed-period path)
    x3 = jax.random.normal(k3, (B, 200), dtype=jnp.float32)
    o3 = pad_trunc_wav(x3, 6400)
    jax.block_until_ready(o3)
    assert o3.shape == (B, 6400)
    assert jnp.array_equal(o3, _reference(x3, 6400))

    print("KERNEL_OK")
</pallas_src>

<mosaic_0001>
module attributes {stable_mosaic.version = 11 : i64} {
  func.func @_repeat_pack_kernel(%arg0: i32, %arg1: memref<2x384xf32, #tpu.memory_space<vmem>>, %arg2: memref<2x384xf32, #tpu.memory_space<vmem>>) attributes {dimension_semantics = [#tpu.dimension_semantics<parallel>], iteration_bounds = array<i64: 3>, scalar_prefetch = 0 : i64, scratch_operands = 0 : i64, tpu.core_type = #tpu.core_type<tc>, window_params = [{pipeline_mode = #tpu.pipeline_mode<synchronous>, transform_indices = @transform_0, window_bounds = array<i64: 2, 384>}, {transform_indices = @transform_1, window_bounds = array<i64: 2, 384>}]} {
    %c0 = arith.constant 0 : index
    %c0_0 = arith.constant 0 : index
    %0 = vector.load %arg1[%c0, %c0_0] : memref<2x384xf32, #tpu.memory_space<vmem>>, vector<2x384xf32>
    %c0_1 = arith.constant 0 : index
    %c0_2 = arith.constant 0 : index
    %1 = vector.load %arg2[%c0_1, %c0_2] : memref<2x384xf32, #tpu.memory_space<vmem>>, vector<2x384xf32>
    tpu.vector_store %arg2[%c0_1, %c0_2], %0 {strides = array<i32>} : memref<2x384xf32, #tpu.memory_space<vmem>>, vector<2x384xf32>,
    return
  }
  func.func @transform_0(%arg0: i32) -> (i32, i32) {
    %c0_i32 = arith.constant 0 : i32
    %c0_i32_0 = arith.constant 0 : i32
    %c0_i32_1 = arith.constant 0 : i32
    return %c0_i32, %c0_i32_0 : i32, i32
  }
  func.func @transform_1(%arg0: i32) -> (i32, i32) {
    %c0_i32 = arith.constant 0 : i32
    %c0_i32_0 = arith.constant 0 : i32
    return %c0_i32, %arg0 : i32, i32
  }
}

</mosaic_0001>

<bundles_post_ra>
// kernel: tpu_custom_call.1
= control target key start
LH: loop header
LB: loop body
LE: loop exit
PB: predicated region body
PF: predicated region fallthrough
CT: control target
= control target key end

     0   :  { %6 = vsyncpa [#allocation3], 0  ;;  %s496_s0 = inlined_call_operand.hbm [shape: f32[2,384], index: 0, kind: input, shape index: {}]   ;;  %s497_s1 = inlined_call_operand.hbm [shape: f32[2,1024], index: 1, kind: output, shape index: {}]  }
   0x1   :  { %7 = vsyncpa [#allocation4], 0 }
   0x2   :  { %9 = vsyncpa [#allocation4 + $0x1], 0  ;;  %s384_s6 = smov 0   ;;  %s386_s7 = smov 0  }
   0x3   :  { %s388_s8 = smov 0   ;;  %s390_s9 = smov 0  }
   0x4 LB: > { %s405_s10 = sadd.s32 4294967295, %s370_s9   ;;  %s200_s11 = sadd.s32 4294967294, %s370_s9   ;;  %s370_s9 = sphi %s390_s9, %s504_s9   ;;  %s366_s8 = sphi %s388_s8, %s503_s8   ;;  %s362_s7 = sphi %s386_s7, %s502_s7   ;;  %s358_s6 = sphi %s384_s6, %s501_s6  }
   0x5   : > { %s409_s12 = sadd.s32 1, %s370_s9   ;;  %s43_s13 = sadd.s32 1, %s366_s8 }
   0x6   : > { %s40_s14 = ssub.s32 %s370_s9, %s409_s12  ;;  %p53_p0 = scmp.ne.s32.totalorder %s366_s8, %s362_s7 }
   0x7   : > { %p41_p1 = scmp.eq.s32.totalorder %s40_s14, 0  ;;  %p54_p2 = scmp.eq.s32.totalorder %s405_s10, 2 }
   0x8   : > { %p59_p3 = scmp.ne.s32.totalorder %s362_s7, %s358_s6  ;;  %p60_p4 = scmp.eq.s32.totalorder %s200_s11, 2 }
   0x9   : > { %s420_s15 = scalar_select %p41_p1, %s366_s8, %s43_s13  }
   0xa   : > { %p422_p5 = por %p54_p2, %p53_p0  ;;  %p426_p6 = por %p60_p4, %p59_p3 }
   0xb   : > { %p201_p7 = scmp.ge.s32.totalorder %s370_s9, 1  ;;  %p67_p8 = scmp.lt.s32.totalorder %s370_s9, 4 }
   0xc   : > { %p227_p9 = scmp.eq.s32.totalorder %s405_s10, 0  ;;  %s79_s20 = sshll.u32 %s496_s0, 4  ;;  %s80_s20 = int_to_ptr.hbm [resolvable:$true] %s79_s20 }
   0xd   : > { %p68_p10 = pnand %p201_p7, %p67_p8  ;;  %s372_s21 = smov [#allocation2]  }
   0xe   : > { %s81_s22 = sshll.u32 %s372_s21, 4  ;;  %s82_s22 = int_to_ptr.vmem [resolvable:$true] %s81_s22 }
   0xf   : > { %p219_p11 = pneg %p68_p10  ;;  %94 = sbr.rel (%p68_p10) target bundleno = 58 (0x3a), region = 24 }
  0x11   : > { %p220_p12 = pnand %p227_p9, %p219_p11 }
  0x13   : > { %222 = dma.hbm_to_vmem [thread:$0]  (!%p220_p12), %s80_s20, 96, %s82_s22, [#allocation3]  }
  0x14   : > { %349 = dma.done.wait (%p227_p9), [#allocation3], 96  }
  0x15   : > { %351 = vsyncadd (%p227_p9), [#allocation3], 4294967200  ;;  %s107_s23 = sand.u32 1, %s362_s7   ;;  %v115_v0 = vld [vmem:[#allocation2] sm:$0x3f]  ;;  %124 = sbr.rel (!%p422_p5) target bundleno = 58 (0x3a), region = 32 }
  0x16   : > { %s213_s24 = smul.u32 6, %s107_s23  ;;  %s437_s26 = scalar_lea.sflag [#allocation4], %s107_s23 }
  0x17   : > { %s125_s27 = smul.u32 (%p422_p5), 3, %s405_s10 }
  0x18   : > { %s109_s25 = scalar_lea.vmem [#allocation5], %s213_s24 }
  0x19   : > { %116 = vst [vmem:[%s109_s25] sm:$0x3f] %v115_v0  ;;  %s126_s28 = ssub.s32 (%p422_p5), 8, %s125_s27 }
  0x1a   : > { %p127_p13 = scmp.lt.s32.totalorder %s126_s28, 3 }
  0x1c   : > { %s506_s28 = smov (!%p127_p13, %s126_s28), 3 }
  0x1d   : > { %s205_s29 = sshll.u32 %s506_s28, 1 }
  0x1e   : > { %s130_s30 = ssub.s32 6, %s205_s29 }
  0x1f   : > { %s131_s2 = sshll.u32 %s130_s30, 4 }
  0x20   : > { %132 = vsyncadd %s437_s26, %s131_s2  ;;  %p446_p0 = scmp.ne.s32.totalorder %s205_s29, 0  ;;  %s212_s4 = smul.u32 6, %s405_s10 }
  0x21   : > { %s209_s5 = sshll.u32 %s506_s28, 5  ;;  %s452_s11 = sshll.u32 %s109_s25, 4  ;;  %s139_s11 = int_to_ptr.vmem [resolvable:$true] %s452_s11 }
  0x22   : > { %s135_s16 = scalar_lea.hbm %s497_s1, %s212_s4  ;;  %s293_s19 = sshra.s32 %s139_s11, 4  ;;  %s294_s19 = int_to_ptr.vmem [resolvable:$true] %s293_s19 }
  0x23   : > { %s140_s18 = sshll.u32 %s135_s16, 4  ;;  %s295_s20 = sshrl.u32 %s209_s5, 4  ;;  %s141_s18 = int_to_ptr.hbm [resolvable:$true] %s140_s18 }
  0x24   : > { %s300_s21 = scalar_lea.vmem %s294_s19, %s295_s20  ;;  %s373_s10 = smov [#allocation5]  }
  0x25   : > { %p301_p1 = scmp.ne.s32.totalorder %s294_s19, %s300_s21  ;;  %s304_s22 = scalar_lea.vmem %s373_s10, 12 }
  0x26   : > { %p306_p4 = scmp.lt.s32.totalorder %s304_s22, %s300_s21 }
  0x27   : > { %p302_p2 = pnand %p301_p1, %p446_p0 }
  0x29   : > { %p303_p3 = pneg %p302_p2 }
  0x2b   : > { %p308_p5 = pnand %p306_p4, %p303_p3 }
  0x2d   : > { %311 = shalt.err (!%p308_p5)
}
  0x2e   : > { %s312_s23 = sshra.s32 %s141_s18, 4  ;;  %s323_s29 = scalar_lea.hbm %s497_s1, 16  ;;  %s313_s23 = int_to_ptr.hbm [resolvable:$true] %s312_s23 }
  0x2f   : > { %s319_s24 = scalar_lea.hbm %s313_s23, %s295_s20  ;;  %p324_p10 = scmp.lt.s32.totalorder %s313_s23, %s497_s1 }
  0x30   : > { %p320_p7 = scmp.ne.s32.totalorder %s313_s23, %s319_s24  ;;  %p325_p11 = scmp.lt.s32.totalorder %s323_s29, %s319_s24 }
  0x32   : > { %p321_p8 = pnand %p320_p7, %p446_p0  ;;  %p326_p12 = por %p325_p11, %p324_p10 }
  0x34   : > { %p322_p9 = pneg %p321_p8 }
  0x36   : > { %p327_p13 = pnand %p326_p12, %p322_p9 }
  0x38   : > { %330 = shalt.err (!%p327_p13)
}
  0x39   : > { %143 = dma.vmem_to_hbm [thread:$0]  (%p446_p0), %s139_s11, %s209_s5, %s141_s18, %s437_s26  }
  0x3a PF: > { %p229_p1 = scmp.ge.s32.totalorder %s370_s9, 2  ;;  %s152_s4 = sand.u32 1, %s358_s6  }
  0x3b   : > { %s153_s13 = scalar_lea.sflag [#allocation4], %s152_s4 }
  0x3c   : > { %p224_p2 = pnand %p229_p1, %p426_p6 }
  0x3e   : > { %p225_p3 = pneg %p224_p2 }
  0x40   : > { %353 = dma.done.wait (%p225_p3), %s153_s13, 96  }
  0x41   : > { %355 = vsyncadd (%p225_p3), %s153_s13, 4294967200  ;;  %p12_p4 = scmp.ge.s32.totalorder %s409_s12, 5   ;;  %s501_s6 = smov %s362_s7 }
  0x42   : > { %s502_s7 = smov %s366_s8  ;;  %s503_s8 = smov %s420_s15 }
  0x43   : > { %s504_s9 = smov %s409_s12  ;;  %14 = sbr.rel (!%p12_p4) target bundleno = 4 (0x4), region = 61 }
  0x48   :  { %159 = vsyncpa [#allocation3], 1 }
  0x49   :  { %161 = vsyncpa [#allocation3 + $0x1], 1 }
  0x4a   :  { %162 = vsyncpa [#allocation4], 1 }
  0x4b   :  { %164 = vsyncpa [#allocation4 + $0x1], 1 }

</bundles_post_ra>
